<compile_context>
chip_gen: v7x
topology: tpu7x:2x2x1
jax: 0.10.0
libtpu: 0.0.40
codegen_flags: <defaults>
</compile_context>

<pallas_src>
import jax
import jax.numpy as jnp
import numpy as np
from jax.experimental import pallas as pl
from jax.experimental.pallas import tpu as pltpu

_LANE = 128          # vreg lane width
_SUBLANE = 8         # f32 sublane count
_MXU_ALIGN = 256     # MXU-aligned batch-tile granularity (also a multiple of 128)
_MAX_TILE_B = 2048


def _round_up(x, m):
    return ((x + m - 1) // m) * m


# -----------------------------------------------------------------------------
# Per-generation VMEM sizing (cached once)
# -----------------------------------------------------------------------------
_VMEM_CFG = None


def _vmem_config():
    """Returns (tile_budget_bytes, vmem_limit_bytes) derived from the chip."""
    global _VMEM_CFG
    if _VMEM_CFG is None:
        try:
            cap = int(getattr(pltpu.get_tpu_info(), "vmem_capacity_bytes", 0))
        except Exception:
            cap = 0
        if cap <= 0:
            cap = 64 << 20                 # conservative fallback: v7x per-core VMEM
        # ~75% of physical VMEM: 96 MiB on v5e/v6e (128 MiB), 48 MiB on v7x (64 MiB)
        limit = min((cap * 3) // 4, 100 << 20)
        budget = limit - (4 << 20)         # headroom for compiler scratch
        _VMEM_CFG = (budget, limit)
    return _VMEM_CFG


# -----------------------------------------------------------------------------
# Fused MLP kernel: (x, w0, b0, ..., w_{L-1}, b_{L-1}, [mul], out)
# -----------------------------------------------------------------------------
def _make_mlp_kernel(n_layers, has_mul):
    def kernel(*refs):
        x_ref = refs[0]
        out_ref = refs[-1]
        mul_ref = refs[-2] if has_mul else None
        param_refs = refs[1:1 + 2 * n_layers]

        h = x_ref[...].astype(jnp.float32)
        for i in range(n_layers):
            w = param_refs[2 * i][...]               # bf16 (in_i, out_i), VMEM-resident
            b = param_refs[2 * i + 1][...]           # f32  (1,  out_i)
            # bf16 MXU operands with f32 accumulation; bias add / ReLU stay f32.
            h = jnp.dot(h.astype(jnp.bfloat16), w,
                        preferred_element_type=jnp.float32) + b
            if i < n_layers - 1:                     # outermost layer is linear
                h = jnp.maximum(h, 0.0)              # ReLU
        if has_mul:
            h = h * mul_ref[...].astype(jnp.float32)
        out_ref[...] = h.astype(out_ref.dtype)

    return kernel


# -----------------------------------------------------------------------------
# Batch-tile sizing (MXU-aligned, VMEM-budgeted, >= 2 grid steps when possible)
# -----------------------------------------------------------------------------
def _tile_vmem_bytes(tile, in_f, out_pad, max_w, has_mul):
    stream = 2 * tile * in_f * 4 + 2 * tile * out_pad * 4   # double-buffered x + out
    if has_mul:
        stream += 2 * tile * out_pad * 4                    # double-buffered mul
    inter = 3 * tile * max_w * 4                            # live f32 + bf16 activations
    return stream + inter


def _choose_tile_b(batch, in_f, out_pad, max_w, resident_bytes, has_mul,
                   budget_bytes):
    b8 = _round_up(batch, _SUBLANE)
    if b8 <= _MXU_ALIGN:
        return b8                                           # tiny batch: one small tile
    tile = min(_MAX_TILE_B, _round_up(b8, _MXU_ALIGN))
    # keep >= 2 grid steps so the "parallel" batch axis feeds both TCs on v7x
    if b8 >= 2 * _MXU_ALIGN:
        tile = min(tile, _round_up((b8 + 1) // 2, _MXU_ALIGN))
    while tile > _MXU_ALIGN and (
            resident_bytes + _tile_vmem_bytes(tile, in_f, out_pad, max_w, has_mul)
            > budget_bytes):
        tile = max(_MXU_ALIGN, _round_up(tile // 2, _MXU_ALIGN))
    return tile


# -----------------------------------------------------------------------------
# Fused forward wrapper
# -----------------------------------------------------------------------------
def mlp_forward(coords, weights, biases, out_features, mul=None):
    """Fused MLP forward.

    coords       : (batch, in_features) f32
    weights[i]   : (in_i_pad, out_i_pad) bf16, already transposed vs. PyTorch
                   (y = x @ W + b) and 128-padded on hidden/output dims
    biases[i]    : (1, out_i_pad) f32
    out_features : logical output width (<= weights[-1].shape[1])
    mul          : optional (batch, out_features) elementwise multiplier
    """
    batch, in_f = coords.shape
    n_layers = len(weights)
    out_pad = weights[-1].shape[1]
    has_mul = mul is not None

    budget, vmem_limit = _vmem_config()

    max_w = max([in_f] + [w.shape[1] for w in weights])
    # Weights/biases are VMEM-resident; count them twice (default double-buffering).
    resident_bytes = 2 * (sum(w.size * w.dtype.itemsize for w in weights)
                          + sum(b.size * b.dtype.itemsize for b in biases))

    min_tile = min(_MXU_ALIGN, _round_up(batch, _SUBLANE))
    if resident_bytes + _tile_vmem_bytes(min_tile, in_f, out_pad, max_w,
                                         has_mul) > budget:
        # TODO(synk): fall back to tiling the hidden/output feature dimension with
        # an f32 accumulator scratch when the (double-buffered) weight set exceeds
        # the VMEM budget (matters on v7x's 64 MiB per-core VMEM).
        raise NotImplementedError(
            "MLP weights too large to keep VMEM-resident on this chip; "
            "feature-dimension tiling not implemented.")

    tile_b = _choose_tile_b(batch, in_f, out_pad, max_w, resident_bytes, has_mul,
                            budget)

    batch_pad = _round_up(batch, tile_b)
    x = coords.astype(jnp.float32)
    if batch_pad != batch:
        x = jnp.pad(x, ((0, batch_pad - batch), (0, 0)))
    if has_mul:
        m = jnp.broadcast_to(mul, (batch, out_features)).astype(jnp.float32)
        m = jnp.pad(m, ((0, batch_pad - batch), (0, out_pad - out_features)))

    grid = (batch_pad // tile_b,)

    in_specs = [pl.BlockSpec((tile_b, in_f), lambda i: (i, 0))]
    args = [x]
    for w, b in zip(weights, biases):
        # constant index_map -> weights/biases stay VMEM-resident across grid steps
        in_specs.append(pl.BlockSpec(w.shape, lambda i: (0, 0)))
        in_specs.append(pl.BlockSpec(b.shape, lambda i: (0, 0)))
        args.append(w)
        args.append(b)
    if has_mul:
        in_specs.append(pl.BlockSpec((tile_b, out_pad), lambda i: (i, 0)))
        args.append(m)

    out_specs = pl.BlockSpec((tile_b, out_pad), lambda i: (i, 0))

    out_full = pl.pallas_call(
        _make_mlp_kernel(n_layers, has_mul),
        grid=grid,
        in_specs=in_specs,
        out_specs=out_specs,
        out_shape=jax.ShapeDtypeStruct((batch_pad, out_pad), jnp.float32),
        compiler_params=pltpu.CompilerParams(
            dimension_semantics=("parallel",),   # shards batch tiles across TCs on v7x
            vmem_limit_bytes=vmem_limit),
    )(*args)

    return out_full[:batch, :out_features]


# -----------------------------------------------------------------------------
# Parameter construction (mimics init_weights_normal for nonlinearity='relu')
# -----------------------------------------------------------------------------
def init_mlp_params(key, in_features, out_features, num_hidden_layers,
                    hidden_features):
    """Returns (weights, biases); weights stored as (in, out) = PyTorch W.T."""
    dims = [in_features] + [hidden_features] * (num_hidden_layers + 1) + [out_features]
    weights, biases = [], []
    for i in range(len(dims) - 1):
        fan_in, fan_out = dims[i], dims[i + 1]
        key, kw, kb = jax.random.split(key, 3)
        # kaiming_normal_(a=0, 'relu', fan_in): std = sqrt(2 / fan_in)
        w = jax.random.normal(kw, (fan_in, fan_out), jnp.float32) * jnp.sqrt(
            2.0 / fan_in)
        # PyTorch Linear default bias: U(-1/sqrt(fan_in), 1/sqrt(fan_in))
        bound = 1.0 / jnp.sqrt(fan_in)
        b = jax.random.uniform(kb, (1, fan_out), jnp.float32, -bound, bound)
        weights.append(w)
        biases.append(b)
    return weights, biases


class MLPPallas:
    """Pallas equivalent of the PyTorch MLP (relu, outermost_linear=True)."""

    def __init__(self, in_features, out_features, num_hidden_layers,
                 hidden_features, key):
        weights, biases = init_mlp_params(key, in_features, out_features,
                                          num_hidden_layers, hidden_features)
        self.in_features = in_features
        self.out_features = out_features
        # Pad hidden/output widths to lane multiples (128) ONCE here; store the
        # weights in bf16 (MXU-native operands) and the biases in f32.
        self.weights_p, self.biases_p = [], []
        prev = in_features                       # input feature dim stays unpadded
        for w, b in zip(weights, biases):
            out_w = w.shape[1]
            out_p = _round_up(out_w, _LANE)
            w_p = jnp.pad(w, ((0, prev - w.shape[0]), (0, out_p - out_w)))
            b_p = jnp.pad(b, ((0, 0), (0, out_p - out_w)))
            self.weights_p.append(w_p.astype(jnp.bfloat16))
            self.biases_p.append(b_p.astype(jnp.float32))
            prev = out_p
        # jit the whole forward so the tiny pad / slice epilogue fuses with the call
        self._fwd = jax.jit(lambda c: mlp_forward(
            c, self.weights_p, self.biases_p, self.out_features))
        self._fwd_mul = jax.jit(lambda c, m: mlp_forward(
            c, self.weights_p, self.biases_p, self.out_features, mul=m))

    def __call__(self, coords, weights=None):
        if weights is None:
            return self._fwd(coords)
        return self._fwd_mul(coords, weights)

    def reference(self, coords, weights=None):
        """Plain-JAX reference with the same bf16-operand / f32-accumulate numerics."""
        h = coords.astype(jnp.float32)
        n = len(self.weights_p)
        for i, (w, b) in enumerate(zip(self.weights_p, self.biases_p)):
            h = jnp.dot(h.astype(jnp.bfloat16), w,
                        preferred_element_type=jnp.float32) + b
            if i < n - 1:
                h = jnp.maximum(h, 0.0)
        h = h[:, :self.out_features]
        if weights is not None:
            h = h * weights
        return h


# -----------------------------------------------------------------------------
# Main
# -----------------------------------------------------------------------------
if __name__ == "__main__":
    in_features = 2
    out_features = 3          # deliberately not lane-dense: exercises padding path
    num_hidden_layers = 2
    hidden_features = 32      # padded to 128 internally
    batch = 16

    key = jax.random.PRNGKey(0)
    kp, kx, km = jax.random.split(key, 3)

    model = MLPPallas(in_features, out_features, num_hidden_layers,
                      hidden_features, kp)

    coords = jax.random.normal(kx, (batch, in_features), jnp.float32)
    out_mul = jax.random.normal(km, (batch, out_features), jnp.float32)

    # forward without the optional `weights` multiplier
    out = model(coords)
    jax.block_until_ready(out)
    assert out.shape == (batch, out_features), out.shape
    ref = model.reference(coords)
    np.testing.assert_allclose(np.asarray(out), np.asarray(ref),
                               rtol=1e-3, atol=1e-3)

    # forward with the optional `weights` multiplier (forward(coords, weights))
    out_w = model(coords, weights=out_mul)
    jax.block_until_ready(out_w)
    assert out_w.shape == (batch, out_features), out_w.shape
    ref_w = model.reference(coords, weights=out_mul)
    np.testing.assert_allclose(np.asarray(out_w), np.asarray(ref_w),
                               rtol=1e-3, atol=1e-3)

    print("KERNEL_OK")
</pallas_src>

<mosaic_0001>
module attributes {stable_mosaic.version = 11 : i64} {
  func.func @kernel(%arg0: i32, %arg1: memref<16x2xf32, #tpu.memory_space<vmem>>, %arg2: memref<2x128xbf16, #tpu.memory_space<vmem>>, %arg3: memref<1x128xf32, #tpu.memory_space<vmem>>, %arg4: memref<128x128xbf16, #tpu.memory_space<vmem>>, %arg5: memref<1x128xf32, #tpu.memory_space<vmem>>, %arg6: memref<128x128xbf16, #tpu.memory_space<vmem>>, %arg7: memref<1x128xf32, #tpu.memory_space<vmem>>, %arg8: memref<128x128xbf16, #tpu.memory_space<vmem>>, %arg9: memref<1x128xf32, #tpu.memory_space<vmem>>, %arg10: memref<16x128xf32, #tpu.memory_space<vmem>>) attributes {dimension_semantics = [#tpu.dimension_semantics<parallel>], iteration_bounds = array<i64: 1>, scalar_prefetch = 0 : i64, scratch_operands = 0 : i64, tpu.core_type = #tpu.core_type<tc>, window_params = [{transform_indices = @transform_0, window_bounds = array<i64: 16, 2>}, {pipeline_mode = #tpu.pipeline_mode<synchronous>, transform_indices = @transform_1, window_bounds = array<i64: 2, 128>}, {pipeline_mode = #tpu.pipeline_mode<synchronous>, transform_indices = @transform_2, window_bounds = array<i64: 1, 128>}, {pipeline_mode = #tpu.pipeline_mode<synchronous>, transform_indices = @transform_3, window_bounds = array<i64: 128, 128>}, {pipeline_mode = #tpu.pipeline_mode<synchronous>, transform_indices = @transform_4, window_bounds = array<i64: 1, 128>}, {pipeline_mode = #tpu.pipeline_mode<synchronous>, transform_indices = @transform_5, window_bounds = array<i64: 128, 128>}, {pipeline_mode = #tpu.pipeline_mode<synchronous>, transform_indices = @transform_6, window_bounds = array<i64: 1, 128>}, {pipeline_mode = #tpu.pipeline_mode<synchronous>, transform_indices = @transform_7, window_bounds = array<i64: 128, 128>}, {pipeline_mode = #tpu.pipeline_mode<synchronous>, transform_indices = @transform_8, window_bounds = array<i64: 1, 128>}, {transform_indices = @transform_9, window_bounds = array<i64: 16, 128>}]} {
    %c0 = arith.constant 0 : index
    %c0_0 = arith.constant 0 : index
    %0 = vector.load %arg1[%c0, %c0_0] : memref<16x2xf32, #tpu.memory_space<vmem>>, vector<16x2xf32>
    %c0_1 = arith.constant 0 : index
    %c0_2 = arith.constant 0 : index
    %1 = vector.load %arg2[%c0_1, %c0_2] : memref<2x128xbf16, #tpu.memory_space<vmem>>, vector<2x128xbf16>
    %c0_3 = arith.constant 0 : index
    %c0_4 = arith.constant 0 : index
    %2 = vector.load %arg3[%c0_3, %c0_4] : memref<1x128xf32, #tpu.memory_space<vmem>>, vector<1x128xf32>
    %3 = arith.truncf %0 : vector<16x2xf32> to vector<16x2xbf16>
    %cst = arith.constant dense<0.000000e+00> : vector<16x128xf32>
    %4 = tpu.matmul %3, %1, %cst {dimension_numbers = #tpu.dot_dimension_numbers<[1], [0], [0], [1], [0, 0, 1, 1], [], []>} : vector<16x2xbf16>, vector<2x128xbf16>, vector<16x128xf32> -> vector<16x128xf32>
    %5 = vector.broadcast %2 : vector<1x128xf32> to vector<16x128xf32>
    %6 = arith.addf %4, %5 : vector<16x128xf32>
    %cst_5 = arith.constant 0.000000e+00 : f32
    %7 = vector.broadcast %cst_5 : f32 to vector<16x128xf32>
    %8 = arith.maximumf %6, %7 : vector<16x128xf32>
    %c0_6 = arith.constant 0 : index
    %c0_7 = arith.constant 0 : index
    %9 = vector.load %arg4[%c0_6, %c0_7] : memref<128x128xbf16, #tpu.memory_space<vmem>>, vector<128x128xbf16>
    %c0_8 = arith.constant 0 : index
    %c0_9 = arith.constant 0 : index
    %10 = vector.load %arg5[%c0_8, %c0_9] : memref<1x128xf32, #tpu.memory_space<vmem>>, vector<1x128xf32>
    %11 = arith.truncf %8 : vector<16x128xf32> to vector<16x128xbf16>
    %cst_10 = arith.constant dense<0.000000e+00> : vector<16x128xf32>
    %12 = tpu.matmul %11, %9, %cst_10 {dimension_numbers = #tpu.dot_dimension_numbers<[1], [0], [0], [1], [0, 0, 1, 1], [], []>} : vector<16x128xbf16>, vector<128x128xbf16>, vector<16x128xf32> -> vector<16x128xf32>
    %13 = vector.broadcast %10 : vector<1x128xf32> to vector<16x128xf32>
    %14 = arith.addf %12, %13 : vector<16x128xf32>
    %cst_11 = arith.constant 0.000000e+00 : f32
    %15 = vector.broadcast %cst_11 : f32 to vector<16x128xf32>
    %16 = arith.maximumf %14, %15 : vector<16x128xf32>
    %c0_12 = arith.constant 0 : index
    %c0_13 = arith.constant 0 : index
    %17 = vector.load %arg6[%c0_12, %c0_13] : memref<128x128xbf16, #tpu.memory_space<vmem>>, vector<128x128xbf16>
    %c0_14 = arith.constant 0 : index
    %c0_15 = arith.constant 0 : index
    %18 = vector.load %arg7[%c0_14, %c0_15] : memref<1x128xf32, #tpu.memory_space<vmem>>, vector<1x128xf32>
    %19 = arith.truncf %16 : vector<16x128xf32> to vector<16x128xbf16>
    %cst_16 = arith.constant dense<0.000000e+00> : vector<16x128xf32>
    %20 = tpu.matmul %19, %17, %cst_16 {dimension_numbers = #tpu.dot_dimension_numbers<[1], [0], [0], [1], [0, 0, 1, 1], [], []>} : vector<16x128xbf16>, vector<128x128xbf16>, vector<16x128xf32> -> vector<16x128xf32>
    %21 = vector.broadcast %18 : vector<1x128xf32> to vector<16x128xf32>
    %22 = arith.addf %20, %21 : vector<16x128xf32>
    %cst_17 = arith.constant 0.000000e+00 : f32
    %23 = vector.broadcast %cst_17 : f32 to vector<16x128xf32>
    %24 = arith.maximumf %22, %23 : vector<16x128xf32>
    %c0_18 = arith.constant 0 : index
    %c0_19 = arith.constant 0 : index
    %25 = vector.load %arg8[%c0_18, %c0_19] : memref<128x128xbf16, #tpu.memory_space<vmem>>, vector<128x128xbf16>
    %c0_20 = arith.constant 0 : index
    %c0_21 = arith.constant 0 : index
    %26 = vector.load %arg9[%c0_20, %c0_21] : memref<1x128xf32, #tpu.memory_space<vmem>>, vector<1x128xf32>
    %27 = arith.truncf %24 : vector<16x128xf32> to vector<16x128xbf16>
    %cst_22 = arith.constant dense<0.000000e+00> : vector<16x128xf32>
    %28 = tpu.matmul %27, %25, %cst_22 {dimension_numbers = #tpu.dot_dimension_numbers<[1], [0], [0], [1], [0, 0, 1, 1], [], []>} : vector<16x128xbf16>, vector<128x128xbf16>, vector<16x128xf32> -> vector<16x128xf32>
    %29 = vector.broadcast %26 : vector<1x128xf32> to vector<16x128xf32>
    %30 = arith.addf %28, %29 : vector<16x128xf32>
    %c0_23 = arith.constant 0 : index
    %c0_24 = arith.constant 0 : index
    %31 = vector.load %arg10[%c0_23, %c0_24] : memref<16x128xf32, #tpu.memory_space<vmem>>, vector<16x128xf32>
    tpu.vector_store %arg10[%c0_23, %c0_24], %30 {strides = array<i32>} : memref<16x128xf32, #tpu.memory_space<vmem>>, vector<16x128xf32>,
    return
  }
  func.func @transform_0(%arg0: i32) -> (i32, i32) {
    %c0_i32 = arith.constant 0 : i32
    %c0_i32_0 = arith.constant 0 : i32
    return %arg0, %c0_i32 : i32, i32
  }
  func.func @transform_1(%arg0: i32) -> (i32, i32) {
    %c0_i32 = arith.constant 0 : i32
    %c0_i32_0 = arith.constant 0 : i32
    %c0_i32_1 = arith.constant 0 : i32
    return %c0_i32, %c0_i32_0 : i32, i32
  }
  func.func @transform_2(%arg0: i32) -> (i32, i32) {
    %c0_i32 = arith.constant 0 : i32
    %c0_i32_0 = arith.constant 0 : i32
    %c0_i32_1 = arith.constant 0 : i32
    return %c0_i32, %c0_i32_0 : i32, i32
  }
  func.func @transform_3(%arg0: i32) -> (i32, i32) {
    %c0_i32 = arith.constant 0 : i32
    %c0_i32_0 = arith.constant 0 : i32
    %c0_i32_1 = arith.constant 0 : i32
    return %c0_i32, %c0_i32_0 : i32, i32
  }
  func.func @transform_4(%arg0: i32) -> (i32, i32) {
    %c0_i32 = arith.constant 0 : i32
    %c0_i32_0 = arith.constant 0 : i32
    %c0_i32_1 = arith.constant 0 : i32
    return %c0_i32, %c0_i32_0 : i32, i32
  }
  func.func @transform_5(%arg0: i32) -> (i32, i32) {
    %c0_i32 = arith.constant 0 : i32
    %c0_i32_0 = arith.constant 0 : i32
    %c0_i32_1 = arith.constant 0 : i32
    return %c0_i32, %c0_i32_0 : i32, i32
  }
  func.func @transform_6(%arg0: i32) -> (i32, i32) {
    %c0_i32 = arith.constant 0 : i32
    %c0_i32_0 = arith.constant 0 : i32
    %c0_i32_1 = arith.constant 0 : i32
    return %c0_i32, %c0_i32_0 : i32, i32
  }
  func.func @transform_7(%arg0: i32) -> (i32, i32) {
    %c0_i32 = arith.constant 0 : i32
    %c0_i32_0 = arith.constant 0 : i32
    %c0_i32_1 = arith.constant 0 : i32
    return %c0_i32, %c0_i32_0 : i32, i32
  }
  func.func @transform_8(%arg0: i32) -> (i32, i32) {
    %c0_i32 = arith.constant 0 : i32
    %c0_i32_0 = arith.constant 0 : i32
    %c0_i32_1 = arith.constant 0 : i32
    return %c0_i32, %c0_i32_0 : i32, i32
  }
  func.func @transform_9(%arg0: i32) -> (i32, i32) {
    %c0_i32 = arith.constant 0 : i32
    %c0_i32_0 = arith.constant 0 : i32
    return %arg0, %c0_i32 : i32, i32
  }
}

</mosaic_0001>

<bundles_post_ra>
// kernel: _lambda_.1
= control target key start
LH: loop header
LB: loop body
LE: loop exit
PB: predicated region body
PF: predicated region fallthrough
CT: control target
= control target key end

     0   :  { %14 = vsyncpa [#allocation3], 0  ;;  %s881_s0 = inlined_call_operand.vmem [shape: f32[16,2], index: 0, kind: input, shape index: {}]   ;;  %s882_s1 = inlined_call_operand.vmem [shape: bf16[2,128], index: 1, kind: input, shape index: {}]   ;;  %s883_s2 = inlined_call_operand.vmem [shape: f32[1,128], index: 2, kind: input, shape index: {}]   ;;  %s884_s3 = inlined_call_operand.hbm [shape: bf16[128,128], index: 3, kind: input, shape index: {}]   ;;  %s885_s4 = inlined_call_operand.vmem [shape: f32[1,128], index: 4, kind: input, shape index: {}]   ;;  %s886_s5 = inlined_call_operand.hbm [shape: bf16[128,128], index: 5, kind: input, shape index: {}]   ;;  %s887_s6 = inlined_call_operand.vmem [shape: f32[1,128], index: 6, kind: input, shape index: {}]   ;;  %s888_s7 = inlined_call_operand.hbm [shape: bf16[128,128], index: 7, kind: input, shape index: {}]   ;;  %s889_s8 = inlined_call_operand.vmem [shape: f32[1,128], index: 8, kind: input, shape index: {}]   ;;  %s890_s9 = inlined_call_operand.vmem [shape: f32[16,128], index: 9, kind: output, shape index: {}]  }
   0x1   :  { %15 = vsyncpa [#allocation5], 0  ;;  %s712_s30 = smov [#allocation4]   ;;  %s713_s11 = smov [#allocation2]  }
   0x2   :  { %s41_s10 = sshll.u32 %s712_s30, 4  ;;  %s27_s12 = sshll.u32 %s713_s11, 4  ;;  %s42_s10 = int_to_ptr.vmem [resolvable:$true] %s41_s10  ;;  %s769_s12 = int_to_ptr.vmem [resolvable:$true] %s27_s12 }
   0x3   :  { %s642_s15 = scalar_lea.hbm %s886_s5, 1024 }
   0x4   :  { %p643_p0 = scmp.ne.s32.totalorder %s886_s5, %s642_s15  ;;  %p646_p1 = scmp.lt.u32.totalorder %s642_s15, %s886_s5 }
   0x6   :  { %p648_p2 = pnand %p646_p1, %p643_p0 }
   0x8   :  { %651 = shalt.err (!%p648_p2)
}
   0x9   :  { %s652_s20 = scalar_lea.vmem %s42_s10, 1024  ;;  %p657_p4 = scmp.lt.s32.totalorder %s42_s10, %s42_s10 }
   0xa   :  { %p653_p3 = scmp.ne.s32.totalorder %s42_s10, %s652_s20  ;;  %p658_p5 = scmp.lt.s32.totalorder %s652_s20, %s652_s20 }
   0xc   :  { %p659_p6 = por %p658_p5, %p657_p4 }
   0xe   :  { %p660_p7 = pnand %p659_p6, %p653_p3 }
  0x10   :  { %663 = shalt.err (!%p660_p7)
}
  0x11   :  { %s714_s21 = smov 64   ;;  %s715_s22 = smov 4  }
  0x12   :  { %47 = dma.hbm_to_vmem [thread:$0]  %s886_s5, 1024, %s42_s10, [#allocation5], %s714_s21, %s714_s21, %s715_s22  }
  0x13   :  { %s664_s27 = scalar_lea.hbm %s884_s3, 1024 }
  0x14   :  { %p665_p8 = scmp.ne.s32.totalorder %s884_s3, %s664_s27  ;;  %p668_p9 = scmp.lt.u32.totalorder %s664_s27, %s884_s3 }
  0x16   :  { %p670_p10 = pnand %p668_p9, %p665_p8 }
  0x18   :  { %673 = shalt.err (!%p670_p10)
}
  0x19   :  { %s674_s13 = scalar_lea.vmem %s769_s12, 1024  ;;  %p679_p12 = scmp.lt.s32.totalorder %s769_s12, %s769_s12 }
  0x1a   :  { %p675_p11 = scmp.ne.s32.totalorder %s769_s12, %s674_s13  ;;  %p680_p13 = scmp.lt.s32.totalorder %s674_s13, %s674_s13 }
  0x1c   :  { %p681_p0 = por %p680_p13, %p679_p12 }
  0x1e   :  { %p682_p1 = pnand %p681_p0, %p675_p11 }
  0x20   :  { %685 = shalt.err (!%p682_p1)
}
  0x21   :  { %33 = dma.hbm_to_vmem [thread:$0]  %s884_s3, 1024, %s769_s12, [#allocation3], %s714_s21, %s714_s21, %s715_s22  }
  0x22   :  { %s716_s14 = smov [#allocation6]   ;;  %s686_s18 = scalar_lea.hbm %s888_s7, 1024 }
  0x23   :  { %s55_s15 = sshll.u32 %s716_s14, 4  ;;  %p687_p2 = scmp.ne.s32.totalorder %s888_s7, %s686_s18  ;;  %s56_s15 = int_to_ptr.vmem [resolvable:$true] %s55_s15 }
  0x24   :  { %p690_p3 = scmp.lt.u32.totalorder %s686_s18, %s888_s7 }
  0x26   :  { %p692_p4 = pnand %p690_p3, %p687_p2 }
  0x28   :  { %695 = shalt.err (!%p692_p4)
}
  0x29   :  { %s696_s25 = scalar_lea.vmem %s56_s15, 1024  ;;  %p701_p6 = scmp.lt.s32.totalorder %s56_s15, %s56_s15 }
  0x2a   :  { %p697_p5 = scmp.ne.s32.totalorder %s56_s15, %s696_s25  ;;  %p702_p7 = scmp.lt.s32.totalorder %s696_s25, %s696_s25 }
  0x2c   :  { %p703_p8 = por %p702_p7, %p701_p6 }
  0x2e   :  { %p704_p9 = pnand %p703_p8, %p697_p5 }
  0x30   :  { %707 = shalt.err (!%p704_p9)
}
  0x31   :  { %61 = dma.hbm_to_vmem [thread:$0]  %s888_s7, 1024, %s56_s15, [#allocation5], %s714_s21, %s714_s21, %s715_s22  }
  0x32   :  { %708 = dma.done.wait [#allocation3], 1024  }
  0x33   :  { %709 = vsyncadd [#allocation3], 4294966272 }
  0x34   :  { %710 = dma.done.wait [#allocation5], 2048  }
  0x35   :  { %711 = vsyncadd [#allocation5], 4294965248  ;;  %v717_v0 = vmov 0.0   ;;  %vm718_vm0 = vmmov 0   ;;  %vm89_vm1 = vcmask 1040384   ;;  %v74_v2 = vld [vmem:[%s881_s0] sm:$0xff] }
  0x36   :  { %545 = vmatprep.subr.bf16.mxu0 %v717_v0  ;;  %547 = vmatprep.mubr.msk.bf16.mxu0 %vm718_vm0, %v717_v0  ;;  %v76_v1 = vld [vmem:[%s882_s1] sm:$0x1]  ;;  %v75_v3 = vld [vmem:[%s881_s0 + $0x8] sm:$0xff]  ;;  %vm85_vm2 = vcmask 15360   ;;  %v620_v8 = vld [vmem:[#allocation2 + $0x10] sm:$0xff]  }
  0x37   :  { %551 = vmatprep.subr.bf16.mxu1 %v717_v0  ;;  %567 = vmatprep.mubr.msk.bf16.mxu1 %vm718_vm0, %v717_v0  ;;  %v91_v4 = vsel %vm89_vm1, %v76_v1, 0  ;;  %v78_v5 = vpack.c.bf16 %v75_v3, %v74_v2  ;;  %v618_v6 = vld [vmem:[#allocation2] sm:$0xff]   ;;  %v619_v7 = vld [vmem:[#allocation2 + $0x8] sm:$0xff]   ;;  %v621_v9 = vld [vmem:[#allocation2 + $0x18] sm:$0xff]  }
  0x38   :  { %546 = vmatpush3.bf16.msra.mxu0 %v91_v4  ;;  %552 = vmatpush3.bf16.msra.mxu1 %v618_v6  ;;  %v622_v10 = vld [vmem:[#allocation2 + $0x20] sm:$0xff]   ;;  %v623_v11 = vld [vmem:[#allocation2 + $0x28] sm:$0xff]   ;;  %v624_v12 = vld [vmem:[#allocation2 + $0x30] sm:$0xff]  }
  0x39   :  { %571 = vmatprep.subr.bf16.mxu0 %v717_v0  ;;  %553 = vmatprep.subr.bf16.mxu1 %v717_v0  ;;  %v625_v13 = vld [vmem:[#allocation2 + $0x38] sm:$0xff]   ;;  %v626_v14 = vld [vmem:[#allocation4] sm:$0xff]   ;;  %v627_v15 = vld [vmem:[#allocation4 + $0x8] sm:$0xff]  }
  0x3a   :  { %v628_v16 = vld [vmem:[#allocation4 + $0x10] sm:$0xff]   ;;  %v629_v17 = vld [vmem:[#allocation4 + $0x18] sm:$0xff]   ;;  %v630_v18 = vld [vmem:[#allocation4 + $0x20] sm:$0xff]  }
  0x3b   :  { %548 = vmatmul.mubr.msk.bf16.vlgmr.msra.gmra.mrb[0].mxu0 %vm85_vm2, %v78_v5  ;;  %v631_v19 = vld [vmem:[#allocation4 + $0x28] sm:$0xff]   ;;  %v487_v20 = vld [vmem:[%s883_s2] ss:$0 sm:$0xff]  ;;  %v632_v30 = vld [vmem:[#allocation4 + $0x30] sm:$0xff]  }
  0x3c   :  { %587 = vmatprep.mubr.msk.bf16.mxu0 %vm718_vm0, %v717_v0  ;;  %554 = vmatpush3.bf16.msra.mxu1 %v619_v7  ;;  %v633_v31 = vld [vmem:[#allocation4 + $0x38] sm:$0xff]   ;;  %v634_v32 = vld [vmem:[#allocation6] sm:$0xff]   ;;  %v635_v33 = vld [vmem:[#allocation6 + $0x8] sm:$0xff]  }
  0x3d   :  { %555 = vmatprep.subr.bf16.mxu1 %v717_v0  ;;  %572 = vmatpush3.bf16.msra.mxu0 %v626_v14  ;;  %v636_v34 = vld [vmem:[#allocation6 + $0x10] sm:$0xff]   ;;  %v637_v35 = vld [vmem:[#allocation6 + $0x18] sm:$0xff]   ;;  %v638_v36 = vld [vmem:[#allocation6 + $0x20] sm:$0xff]  }
  0x3e   :  { %573 = vmatprep.subr.bf16.mxu0 %v717_v0  ;;  %v639_v37 = vld [vmem:[#allocation6 + $0x28] sm:$0xff]   ;;  %v489_v38 = vld [vmem:[%s885_s4] ss:$0 sm:$0xff]  ;;  %v640_v48 = vld [vmem:[#allocation6 + $0x30] sm:$0xff]  }
  0x3f   :  { %v641_v49 = vld [vmem:[#allocation6 + $0x38] sm:$0xff]   ;;  %v498_v50 = vld [vmem:[%s887_s6] ss:$0 sm:$0xff] }
  0x40   :  { %556 = vmatpush3.bf16.msra.mxu1 %v620_v8  ;;  %v507_v60 = vld [vmem:[%s889_s8] ss:$0 sm:$0xff] }
  0x41   :  { %557 = vmatprep.subr.bf16.mxu1 %v717_v0  ;;  %574 = vmatpush3.bf16.msra.mxu0 %v627_v15 }
  0x42   :  { %575 = vmatprep.subr.bf16.mxu0 %v717_v0 }
  0x44   :  { %558 = vmatpush3.bf16.msra.mxu1 %v621_v9 }
  0x45   :  { %559 = vmatprep.subr.bf16.mxu1 %v717_v0  ;;  %576 = vmatpush3.bf16.msra.mxu0 %v628_v16 }
  0x46   :  { %577 = vmatprep.subr.bf16.mxu0 %v717_v0 }
  0x48   :  { %560 = vmatpush3.bf16.msra.mxu1 %v622_v10 }
  0x49   :  { %561 = vmatprep.subr.bf16.mxu1 %v717_v0  ;;  %578 = vmatpush3.bf16.msra.mxu0 %v629_v17 }
  0x4a   :  { %579 = vmatprep.subr.bf16.mxu0 %v717_v0 }
  0x4c   :  { %562 = vmatpush3.bf16.msra.mxu1 %v623_v11 }
  0x4d   :  { %563 = vmatprep.subr.bf16.mxu1 %v717_v0  ;;  %580 = vmatpush3.bf16.msra.mxu0 %v630_v18 }
  0x4e   :  { %581 = vmatprep.subr.bf16.mxu0 %v717_v0 }
  0x50   :  { %564 = vmatpush3.bf16.msra.mxu1 %v624_v12 }
  0x51   :  { %565 = vmatprep.subr.bf16.mxu1 %v717_v0  ;;  %582 = vmatpush3.bf16.msra.mxu0 %v631_v19 }
  0x52   :  { %583 = vmatprep.subr.bf16.mxu0 %v717_v0 }
  0x54   :  { %566 = vmatpush3.bf16.msra.mxu1 %v625_v13 }
  0x55   :  { %591 = vmatprep.subr.bf16.mxu1 %v717_v0  ;;  %584 = vmatpush3.bf16.msra.mxu0 %v632_v30 }
  0x56   :  { %585 = vmatprep.subr.bf16.mxu0 %v717_v0 }
  0x59   :  { %586 = vmatpush3.bf16.msra.mxu0 %v633_v31 }
 0x10e   :  { %v127_v21 = vpop.f32.mrb[0].mxu0 }
 0x10f   :  { %v128_v22 = vadd.f32 %v487_v20, %v127_v21  ;;  %v549_v23 = vpop.f32.mrb[1].mxu0 }
 0x110   :  { %v130_v24 = vpop.f32.mrb[2].mxu0 }
 0x111   :  { %v131_v25 = vadd.f32 %v487_v20, %v130_v24  ;;  %v550_v26 = vpop.f32.mrb[3].mxu0  ;;  %v134_v27 = vmax.f32 %v128_v22, 0.0 }
 0x113   :  { %v135_v28 = vmax.f32 %v131_v25, 0.0 }
 0x115   :  { %v153_v29 = vpack.c.bf16 %v135_v28, %v134_v27 }
 0x117   :  { %568 = vmatmul.mubr.bf16.vlgmr.msra.gmra.mrb[0].mxu1 %v153_v29 }
 0x118   :  { %607 = vmatprep.mubr.msk.bf16.mxu1 %vm718_vm0, %v717_v0  ;;  %592 = vmatpush3.bf16.msra.mxu1 %v634_v32 }
 0x119   :  { %593 = vmatprep.subr.bf16.mxu1 %v717_v0 }
 0x11c   :  { %594 = vmatpush3.bf16.msra.mxu1 %v635_v33 }
 0x11d   :  { %595 = vmatprep.subr.bf16.mxu1 %v717_v0 }
 0x120   :  { %596 = vmatpush3.bf16.msra.mxu1 %v636_v34 }
 0x121   :  { %597 = vmatprep.subr.bf16.mxu1 %v717_v0 }
 0x124   :  { %598 = vmatpush3.bf16.msra.mxu1 %v637_v35 }
 0x125   :  { %599 = vmatprep.subr.bf16.mxu1 %v717_v0 }
 0x128   :  { %600 = vmatpush3.bf16.msra.mxu1 %v638_v36 }
 0x129   :  { %601 = vmatprep.subr.bf16.mxu1 %v717_v0 }
 0x12c   :  { %602 = vmatpush3.bf16.msra.mxu1 %v639_v37 }
 0x12d   :  { %603 = vmatprep.subr.bf16.mxu1 %v717_v0 }
 0x130   :  { %604 = vmatpush3.bf16.msra.mxu1 %v640_v48 }
 0x131   :  { %605 = vmatprep.subr.bf16.mxu1 %v717_v0 }
 0x134   :  { %606 = vmatpush3.bf16.msra.mxu1 %v641_v49 }
 0x1ea   :  { %v242_v39 = vpop.f32.mrb[0].mxu1 }
 0x1eb   :  { %v243_v40 = vadd.f32 %v489_v38, %v242_v39  ;;  %v569_v41 = vpop.f32.mrb[1].mxu1 }
 0x1ec   :  { %v245_v42 = vpop.f32.mrb[2].mxu1 }
 0x1ed   :  { %v246_v43 = vadd.f32 %v489_v38, %v245_v42  ;;  %v570_v44 = vpop.f32.mrb[3].mxu1  ;;  %v249_v45 = vmax.f32 %v243_v40, 0.0 }
 0x1ef   :  { %v250_v46 = vmax.f32 %v246_v43, 0.0 }
 0x1f1   :  { %v268_v47 = vpack.c.bf16 %v250_v46, %v249_v45 }
 0x1f3   :  { %588 = vmatmul.mubr.bf16.vlgmr.msra.gmra.mrb[4].mxu0 %v268_v47 }
 0x2c6   :  { %v357_v51 = vpop.f32.mrb[4].mxu0 }
 0x2c7   :  { %v358_v52 = vadd.f32 %v498_v50, %v357_v51  ;;  %v589_v53 = vpop.f32.mrb[5].mxu0 }
 0x2c8   :  { %v360_v54 = vpop.f32.mrb[6].mxu0 }
 0x2c9   :  { %v361_v55 = vadd.f32 %v498_v50, %v360_v54  ;;  %v590_v56 = vpop.f32.mrb[7].mxu0  ;;  %v364_v57 = vmax.f32 %v358_v52, 0.0 }
 0x2cb   :  { %v365_v58 = vmax.f32 %v361_v55, 0.0 }
 0x2cd   :  { %v383_v59 = vpack.c.bf16 %v365_v58, %v364_v57 }
 0x2cf   :  { %608 = vmatmul.mubr.bf16.vlgmr.msra.gmra.mrb[4].mxu1 %v383_v59 }
 0x3a2   :  { %v472_v61 = vpop.f32.mrb[4].mxu1 }
 0x3a3   :  { %v473_v62 = vadd.f32 %v507_v60, %v472_v61  ;;  %v609_v63 = vpop.f32.mrb[5].mxu1 }
 0x3a4   :  { %v475_v0 = vpop.f32.mrb[6].mxu1 }
 0x3a5   :  { %479 = vst [vmem:[%s890_s9] sm:$0xff] %v473_v62  ;;  %v476_v1 = vadd.f32 %v507_v60, %v475_v0  ;;  %v610_v2 = vpop.f32.mrb[7].mxu1 }
 0x3a7   :  { %480 = vst [vmem:[%s890_s9 + $0x8] sm:$0xff] %v476_v1 }
 0x3a8   :  { %485 = vsyncpa [#allocation3], 1 }
 0x3a9   :  { %486 = vsyncpa [#allocation5], 1 }

</bundles_post_ra>
